<compile_context>
chip_gen: v7x
topology: tpu7x:2x2x1
jax: 0.10.0
libtpu: 0.0.40
codegen_flags: <defaults>
</compile_context>

<pallas_src>
import numpy as np
import jax
import jax.numpy as jnp
from jax.experimental import pallas as pl
from jax.experimental.pallas import tpu as pltpu


def _round_up(x, m):
    return (x + m - 1) // m * m


# ---------------------------------------------------------------------------
# Fused kernel: per row-tile of nodes
#   feat[i, :]   = masked mean of token embeddings of node i
#   edge_w[i, j] = cooccur[i, j] if cooccur[i, j] > 0 and i != j else 0
# ---------------------------------------------------------------------------
def fused_graph_kernel(emb_ref, mask_ref, co_ref, feat_ref, w_ref):
    # ---- node features: masked mean over tokens (accumulate in f32) ----
    emb = emb_ref[...].astype(jnp.float32)                 # (TR, T, D) bf16 -> f32
    mask = mask_ref[...]                                   # (TR, T)    f32
    msum = jnp.sum(emb * mask[:, :, None], axis=1)         # (TR, D)
    cnt = jnp.sum(mask, axis=1, keepdims=True)             # (TR, 1)
    inv = pl.reciprocal(jnp.maximum(cnt, 1.0), approx=True)  # EUP slot, ~free
    feat_ref[...] = msum * inv

    # ---- edge weight map (mask is implicit: edge iff w > 0) ----
    co = co_ref[...]                                       # (TR, NC) lane-dense
    tr, nc = co.shape
    row0 = pl.program_id(0) * tr
    ii = row0 + jax.lax.broadcasted_iota(jnp.int32, (tr, nc), 0)
    jj = jax.lax.broadcasted_iota(jnp.int32, (tr, nc), 1)
    keep = jnp.logical_and(co > 0.0, ii != jj)             # VPU filler under the store
    w_ref[...] = jnp.where(keep, co, jnp.zeros_like(co))


def _fused_graph_call(tok_emb_bf16, tok_mask, cooccur_pad, *, tile_rows):
    n_pad, t, d = tok_emb_bf16.shape
    nc_pad = cooccur_pad.shape[1]
    grid = (n_pad // tile_rows,)
    return pl.pallas_call(
        fused_graph_kernel,
        out_shape=(
            jax.ShapeDtypeStruct((n_pad, d), jnp.float32),        # node features
            jax.ShapeDtypeStruct((n_pad, nc_pad), jnp.float32),   # edge weights
        ),
        grid_spec=pltpu.PrefetchScalarGridSpec(
            num_scalar_prefetch=0,
            grid=grid,
            in_specs=[
                pl.BlockSpec((tile_rows, t, d), lambda i: (i, 0, 0)),
                pl.BlockSpec((tile_rows, t), lambda i: (i, 0)),
                pl.BlockSpec((tile_rows, nc_pad), lambda i: (i, 0)),
            ],
            out_specs=(
                pl.BlockSpec((tile_rows, d), lambda i: (i, 0)),
                pl.BlockSpec((tile_rows, nc_pad), lambda i: (i, 0)),
            ),
        ),
        compiler_params=pltpu.CompilerParams(
            dimension_semantics=("parallel",),
            # explicit scoped-VMEM budget: safe on v5e/v6e/v7x, above the
            # 16 MiB v5e default; re-derive tile_rows for very large N/T/D
            # (v7x only has 64 MiB physical VMEM).
            vmem_limit_bytes=32 * 1024 * 1024,
        ),
    )(tok_emb_bf16, tok_mask, cooccur_pad)


# ---------------------------------------------------------------------------
# Wrapper mimicking the forward pass: pad -> one fused pallas_call -> host
# glue extracting the ragged edge list (data-dependent length).
# ---------------------------------------------------------------------------
def cooccur_graph_forward(tok_emb, tok_mask, cooccur_mat, *, tile_rows=256):
    N, T, D = tok_emb.shape

    # Rows: pad to a multiple of 8 sublanes, then of tile_rows (no assert on N).
    n_rows = _round_up(N, 8)
    tile_rows = max(8, (min(tile_rows, n_rows) // 8) * 8)
    n_rows = _round_up(n_rows, tile_rows)
    # Columns: pad to a multiple of 128 lanes -> unmasked, lane-dense stores.
    nc = _round_up(N, 128)

    # bf16 embeddings in HBM (bandwidth), zero-padded; padding rows have an
    # all-zero mask -> cnt clamps to 1 -> feature 0, and zero cooccur -> no edges.
    emb = jnp.zeros((n_rows, T, D), jnp.bfloat16).at[:N].set(tok_emb.astype(jnp.bfloat16))
    msk = jnp.zeros((n_rows, T), jnp.float32).at[:N].set(tok_mask.astype(jnp.float32))
    co = jnp.zeros((n_rows, nc), jnp.float32).at[:N, :N].set(cooccur_mat.astype(jnp.float32))

    feat, edge_w = jax.block_until_ready(
        _fused_graph_call(emb, msk, co, tile_rows=tile_rows)
    )

    # Single D2H of the two result arrays; mask is implicit in edge_w > 0.
    feat_np = np.asarray(feat)[:N]
    edge_w_np = np.asarray(edge_w)[:N, :N]

    # Ragged edge-list extraction is data-dependent length -> host glue
    # (matches the Python double loop of the original _genEdge).
    src, dst = np.nonzero(edge_w_np > 0.0)
    edge_index = np.stack([src, dst], axis=0).astype(np.int64)
    edge_attr = edge_w_np[src, dst].reshape(-1, 1).astype(np.float32)

    # TODO(synk): BERT tokenization/embedding, string/dict node typing and the
    # torch_geometric HeteroData container are host-side glue with no Pallas
    # equivalent; we return a plain dict with the numeric graph fields.
    return {"x": feat_np, "edge_index": edge_index, "edge_attr": edge_attr}


# ---------------------------------------------------------------------------
# Pure numpy reference for verification.
# ---------------------------------------------------------------------------
def reference_forward(tok_emb_f32, tok_mask, cooccur_mat):
    emb = np.asarray(tok_emb_f32, dtype=np.float32)
    msk = np.asarray(tok_mask, dtype=np.float32)
    co = np.asarray(cooccur_mat, dtype=np.float32)
    cnt = np.maximum(msk.sum(axis=1, keepdims=True), 1.0)
    feat = (emb * msk[:, :, None]).sum(axis=1) / cnt
    N = co.shape[0]
    edges, attrs = [], []
    for i in range(N):
        for j in range(N):
            if j == i:
                continue
            if co[i, j] > 0:
                edges.append([i, j])
                attrs.append([co[i, j]])
    edge_index = np.array(edges, dtype=np.int64).T if edges else np.zeros((2, 0), np.int64)
    edge_attr = np.array(attrs, dtype=np.float32) if attrs else np.zeros((0, 1), np.float32)
    return feat, edge_index, edge_attr


if __name__ == "__main__":
    # Synthetic, deterministic "pre-trained embedding" + co-occurrence data.
    N_NODES = 16      # number of label / protocol nodes
    T_TOKENS = 8      # max overview tokens per node
    D_EMBED = 128     # embedding dim (lane-aligned)

    key = jax.random.PRNGKey(0)
    k_emb, k_co = jax.random.split(key)

    tok_emb = jax.random.normal(k_emb, (N_NODES, T_TOKENS, D_EMBED), dtype=jnp.float32)

    # Each node has a varying number of valid tokens (ragged -> dense mask).
    counts = 1 + (jnp.arange(N_NODES) % T_TOKENS)
    tok_mask = (jnp.arange(T_TOKENS)[None, :] < counts[:, None]).astype(jnp.float32)

    # Sparse-ish symmetric non-negative co-occurrence matrix with zero diagonal.
    raw = jax.random.uniform(k_co, (N_NODES, N_NODES), dtype=jnp.float32)
    raw = 0.5 * (raw + raw.T)
    cooccur_mat = jnp.where(raw > 0.6, raw, 0.0)
    cooccur_mat = cooccur_mat * (1.0 - jnp.eye(N_NODES, dtype=jnp.float32))

    graph = cooccur_graph_forward(tok_emb, tok_mask, cooccur_mat)

    # Reference uses the same bf16-rounded embeddings the kernel reads from HBM.
    emb_bf16_as_f32 = np.asarray(tok_emb.astype(jnp.bfloat16).astype(jnp.float32))
    ref_feat, ref_edge_index, ref_edge_attr = reference_forward(
        emb_bf16_as_f32, tok_mask, cooccur_mat
    )

    # Feature tolerance covers the approx reciprocal (~2^-12 rel error).
    np.testing.assert_allclose(graph["x"], ref_feat, rtol=1e-3, atol=1e-3)
    assert graph["edge_index"].shape == ref_edge_index.shape
    np.testing.assert_array_equal(graph["edge_index"], ref_edge_index)
    np.testing.assert_allclose(graph["edge_attr"], ref_edge_attr, rtol=1e-6, atol=1e-6)

    print("KERNEL_OK")
</pallas_src>

<mosaic_0001>
module attributes {stable_mosaic.version = 11 : i64} {
  func.func @fused_graph_kernel(%arg0: i32, %arg1: memref<16x8x128xbf16, #tpu.memory_space<vmem>>, %arg2: memref<16x8xf32, #tpu.memory_space<vmem>>, %arg3: memref<16x128xf32, #tpu.memory_space<vmem>>, %arg4: memref<16x128xf32, #tpu.memory_space<vmem>>, %arg5: memref<16x128xf32, #tpu.memory_space<vmem>>) attributes {dimension_semantics = [#tpu.dimension_semantics<parallel>], iteration_bounds = array<i64: 1>, scalar_prefetch = 0 : i64, scratch_operands = 0 : i64, tpu.core_type = #tpu.core_type<tc>, window_params = [{transform_indices = @transform_0, window_bounds = array<i64: 16, 8, 128>}, {transform_indices = @transform_1, window_bounds = array<i64: 16, 8>}, {transform_indices = @transform_2, window_bounds = array<i64: 16, 128>}, {transform_indices = @transform_3, window_bounds = array<i64: 16, 128>}, {transform_indices = @transform_4, window_bounds = array<i64: 16, 128>}]} {
    %c0 = arith.constant 0 : index
    %c0_0 = arith.constant 0 : index
    %c0_1 = arith.constant 0 : index
    %0 = vector.load %arg1[%c0, %c0_0, %c0_1] : memref<16x8x128xbf16, #tpu.memory_space<vmem>>, vector<16x8x128xbf16>
    %1 = arith.extf %0 : vector<16x8x128xbf16> to vector<16x8x128xf32>
    %c0_2 = arith.constant 0 : index
    %c0_3 = arith.constant 0 : index
    %2 = vector.load %arg2[%c0_2, %c0_3] : memref<16x8xf32, #tpu.memory_space<vmem>>, vector<16x8xf32>
    %3 = vector.shape_cast %2 : vector<16x8xf32> to vector<16x8x1xf32>
    %4 = vector.broadcast %3 : vector<16x8x1xf32> to vector<16x8x128xf32>
    %5 = arith.mulf %1, %4 : vector<16x8x128xf32>
    %cst = arith.constant dense<0.000000e+00> : vector<16x128xf32>
    %6 = vector.multi_reduction <add>, %5, %cst [1] : vector<16x8x128xf32> to vector<16x128xf32>
    %cst_4 = arith.constant dense<0.000000e+00> : vector<16xf32>
    %7 = vector.multi_reduction <add>, %2, %cst_4 [1] : vector<16x8xf32> to vector<16xf32>
    %8 = vector.shape_cast %7 : vector<16xf32> to vector<16x1xf32>
    %cst_5 = arith.constant 1.000000e+00 : f32
    %9 = vector.broadcast %cst_5 : f32 to vector<16x1xf32>
    %10 = arith.maximumf %8, %9 : vector<16x1xf32>
    %11 = tpu.reciprocal %10 {approx = true} : vector<16x1xf32> -> vector<16x1xf32>
    %12 = vector.broadcast %11 : vector<16x1xf32> to vector<16x128xf32>
    %13 = arith.mulf %6, %12 : vector<16x128xf32>
    %c0_6 = arith.constant 0 : index
    %c0_7 = arith.constant 0 : index
    %14 = vector.load %arg4[%c0_6, %c0_7] : memref<16x128xf32, #tpu.memory_space<vmem>>, vector<16x128xf32>
    tpu.vector_store %arg4[%c0_6, %c0_7], %13 {strides = array<i32>} : memref<16x128xf32, #tpu.memory_space<vmem>>, vector<16x128xf32>,
    %c0_8 = arith.constant 0 : index
    %c0_9 = arith.constant 0 : index
    %15 = vector.load %arg3[%c0_8, %c0_9] : memref<16x128xf32, #tpu.memory_space<vmem>>, vector<16x128xf32>
    %c16_i32 = arith.constant 16 : i32
    %16 = arith.muli %arg0, %c16_i32 : i32
    %17 = tpu.iota {dimensions = array<i32: 0>} : vector<16x128xi32>
    %18 = vector.broadcast %16 : i32 to vector<16x128xi32>
    %19 = arith.addi %18, %17 : vector<16x128xi32>
    %20 = tpu.iota {dimensions = array<i32: 1>} : vector<16x128xi32>
    %cst_10 = arith.constant 0.000000e+00 : f32
    %21 = vector.broadcast %cst_10 : f32 to vector<16x128xf32>
    %22 = arith.cmpf ogt, %15, %21 : vector<16x128xf32>
    %23 = arith.cmpi ne, %19, %20 : vector<16x128xi32>
    %24 = arith.andi %22, %23 : vector<16x128xi1>
    %cst_11 = arith.constant 0.000000e+00 : f32
    %25 = vector.broadcast %cst_11 : f32 to vector<16x128xf32>
    %26 = arith.select %24, %15, %25 : vector<16x128xi1>, vector<16x128xf32>
    %c0_12 = arith.constant 0 : index
    %c0_13 = arith.constant 0 : index
    %27 = vector.load %arg5[%c0_12, %c0_13] : memref<16x128xf32, #tpu.memory_space<vmem>>, vector<16x128xf32>
    tpu.vector_store %arg5[%c0_12, %c0_13], %26 {strides = array<i32>} : memref<16x128xf32, #tpu.memory_space<vmem>>, vector<16x128xf32>,
    return
  }
  func.func @transform_0(%arg0: i32) -> (i32, i32, i32) {
    %c0_i32 = arith.constant 0 : i32
    %c0_i32_0 = arith.constant 0 : i32
    %c0_i32_1 = arith.constant 0 : i32
    return %arg0, %c0_i32, %c0_i32_0 : i32, i32, i32
  }
  func.func @transform_1(%arg0: i32) -> (i32, i32) {
    %c0_i32 = arith.constant 0 : i32
    %c0_i32_0 = arith.constant 0 : i32
    return %arg0, %c0_i32 : i32, i32
  }
  func.func @transform_2(%arg0: i32) -> (i32, i32) {
    %c0_i32 = arith.constant 0 : i32
    %c0_i32_0 = arith.constant 0 : i32
    return %arg0, %c0_i32 : i32, i32
  }
  func.func @transform_3(%arg0: i32) -> (i32, i32) {
    %c0_i32 = arith.constant 0 : i32
    %c0_i32_0 = arith.constant 0 : i32
    return %arg0, %c0_i32 : i32, i32
  }
  func.func @transform_4(%arg0: i32) -> (i32, i32) {
    %c0_i32 = arith.constant 0 : i32
    %c0_i32_0 = arith.constant 0 : i32
    return %arg0, %c0_i32 : i32, i32
  }
}

</mosaic_0001>

<bundles_post_ra>
// kernel: tpu_custom_call.1
= control target key start
LH: loop header
LB: loop body
LE: loop exit
PB: predicated region body
PF: predicated region fallthrough
CT: control target
= control target key end

     0   :  { %10 = vsyncpa [#allocation3], 0  ;;  %s714_s0 = inlined_call_operand.hbm [shape: bf16[16,8,128], index: 0, kind: input, shape index: {}]   ;;  %s715_s1 = inlined_call_operand.vmem [shape: f32[16,8], index: 1, kind: input, shape index: {}]   ;;  %s716_s2 = inlined_call_operand.vmem [shape: f32[16,128], index: 2, kind: input, shape index: {}]   ;;  %s717_s3 = inlined_call_operand.hbm [shape: f32[16,128], index: 3, kind: output, shape index: {0}]   ;;  %s718_s4 = inlined_call_operand.hbm [shape: f32[16,128], index: 4, kind: output, shape index: {1}]  }
   0x1   :  { %11 = vsyncpa [#allocation4], 0 }
   0x2   :  { %12 = vsyncpa [#allocation7], 0  ;;  %s580_s15 = smov [#allocation2]   ;;  %s508_s19 = scalar_lea.hbm %s714_s0, 1024 }
   0x3   :  { %s18_s16 = sshll.u32 %s580_s15, 4  ;;  %p509_p0 = scmp.ne.s32.totalorder %s714_s0, %s508_s19  ;;  %s19_s16 = int_to_ptr.vmem [resolvable:$true] %s18_s16 }
   0x4   :  { %p512_p1 = scmp.lt.u32.totalorder %s508_s19, %s714_s0 }
   0x6   :  { %p514_p2 = pnand %p512_p1, %p509_p0 }
   0x8   :  { %517 = shalt.err (!%p514_p2)
}
   0x9   :  { %s518_s24 = scalar_lea.vmem %s19_s16, 1024  ;;  %p523_p4 = scmp.lt.s32.totalorder %s19_s16, %s19_s16 }
   0xa   :  { %p519_p3 = scmp.ne.s32.totalorder %s19_s16, %s518_s24  ;;  %p524_p5 = scmp.lt.s32.totalorder %s518_s24, %s518_s24 }
   0xc   :  { %p525_p6 = por %p524_p5, %p523_p4 }
   0xe   :  { %p526_p7 = pnand %p525_p6, %p519_p3 }
  0x10   :  { %529 = shalt.err (!%p526_p7)
}
  0x11   :  { %s581_s25 = smov 64   ;;  %s582_s26 = smov 4  }
  0x12   :  { %24 = dma.hbm_to_vmem [thread:$0]  %s714_s0, 1024, %s19_s16, [#allocation3], %s581_s25, %s581_s25, %s582_s26  }
  0x13   :  { %574 = dma.done.wait [#allocation3], 1024  }
  0x14   :  { %575 = vsyncadd [#allocation3], 4294966272  ;;  %v66_v0 = vlaneseq  ;;  %vm290_vm0 = vcmask 64512   ;;  %v64_v3 = vld [vmem:[%s715_s1] sm:$0xff]  ;;  %v65_v4 = vld [vmem:[%s715_s1 + $0x8] sm:$0xff]  ;;  %s583_s9 = smov [#allocation6]  }
  0x15   :  { %v291_v5 = vsel %vm290_vm0, %v64_v3, 0.0  ;;  %v294_v7 = vsel %vm290_vm0, %v65_v4, 0.0  ;;  %v404_v30 = vld [vmem:[%s716_s2] sm:$0xff]  ;;  %v405_v31 = vld [vmem:[%s716_s2 + $0x8] sm:$0xff]  ;;  %s442_s10 = sshll.u32 %s583_s9, 4  ;;  %s443_s10 = int_to_ptr.vmem [resolvable:$true] %s442_s10 }
  0x16   :  { %v67_v1 = vshrl.u32 %v66_v0, 7  ;;  %292 = vadd.xlane.f32.xlu0 %v291_v5  ;;  %v414_v33 = vand.u32 127, %v66_v0  ;;  %vm415_vm1 = vcmp.gt.f32.partialorder %v404_v30, 0.0  ;;  %vm416_vm2 = vcmp.gt.f32.partialorder %v405_v31, 0.0  ;;  %s530_s11 = scalar_lea.vmem %s443_s10, 256  ;;  %p535_p9 = scmp.lt.s32.totalorder %s443_s10, %s443_s10 }
  0x17   :  { %p531_p8 = scmp.ne.s32.totalorder %s443_s10, %s530_s11  ;;  %p536_p10 = scmp.lt.s32.totalorder %s530_s11, %s530_s11 }
  0x18   :  { %v75_v2 = vsub.s32 1, %v67_v1  ;;  %v82_v9 = vsub.s32 2, %v67_v1  ;;  %v68_v11 = vsub.s32 0, %v67_v1  ;;  %v89_v13 = vsub.s32 3, %v67_v1 }
  0x19   :  { %v96_v17 = vsub.s32 4, %v67_v1  ;;  %v103_v20 = vsub.s32 5, %v67_v1  ;;  %v110_v23 = vsub.s32 6, %v67_v1  ;;  %v117_v26 = vsub.s32 7, %v67_v1  ;;  %p537_p11 = por %p536_p10, %p535_p9 }
  0x1a   :  { %v76_v6 = vrot.slane %v64_v3, %v75_v2  ;;  %v132_v8 = vrot.slane %v65_v4, %v75_v2  ;;  %295 = vadd.xlane.f32.xlu0 %v294_v7  ;;  %v139_v10 = vrot.slane %v65_v4, %v82_v9  ;;  %v69_v12 = vrot.slane %v64_v3, %v68_v11 }
  0x1b   :  { %v90_v14 = vrot.slane %v64_v3, %v89_v13  ;;  %v125_v15 = vrot.slane %v65_v4, %v68_v11  ;;  %v146_v16 = vrot.slane %v65_v4, %v89_v13  ;;  %v83_v18 = vrot.slane %v64_v3, %v82_v9  ;;  %p538_p12 = pnand %p537_p11, %p531_p8 }
  0x1c   :  { %78 = vbcast.lane.b32.xlu1 %v76_v6, 256  ;;  %v97_v19 = vrot.slane %v64_v3, %v96_v17  ;;  %v153_v21 = vrot.slane %v65_v4, %v96_v17  ;;  %v104_v22 = vrot.slane %v64_v3, %v103_v20  ;;  %v160_v24 = vrot.slane %v65_v4, %v103_v20 }
  0x1d   :  { %v111_v25 = vrot.slane %v64_v3, %v110_v23  ;;  %v167_v27 = vrot.slane %v65_v4, %v110_v23  ;;  %v118_v28 = vrot.slane %v64_v3, %v117_v26  ;;  %v174_v29 = vrot.slane %v65_v4, %v117_v26 }
  0x1e   :  { %v409_v32 = vadd.s32 8, %v67_v1  ;;  %vm417_vm3 = vcmp.ne.s32.totalorder %v67_v1, %v414_v33 }
  0x1f   :  { %vm419_vm5 = vmand %vm415_vm1, %vm417_vm3 }
  0x20   :  { %134 = vbcast.lane.b32.xlu1 %v132_v8, 256  ;;  %vm418_vm4 = vcmp.ne.s32.totalorder %v409_v32, %v414_v33  ;;  %v421_v34 = vsel %vm419_vm5, %v404_v30, 0.0 }
  0x21   :  { %vm420_vm6 = vmand %vm416_vm2, %vm418_vm4  ;;  %423 = vst [vmem:[#allocation6] sm:$0xff] %v421_v34 }
  0x22   :  { %v422_v35 = vsel %vm420_vm6, %v405_v31, 0.0 }
  0x23   :  { %424 = vst [vmem:[#allocation6 + $0x8] sm:$0xff] %v422_v35 }
  0x24   :  { %141 = vbcast.lane.b32.xlu1 %v139_v10, 256 }
  0x28   :  { %71 = vbcast.lane.b32.xlu1 %v69_v12, 256 }
  0x2c   :  { %92 = vbcast.lane.b32.xlu1 %v90_v14, 256 }
  0x30   :  { %127 = vbcast.lane.b32.xlu1 %v125_v15, 256  ;;  %85 = vbcast.lane.b32.xlu0 %v83_v18, 256 }
  0x34   :  { %148 = vbcast.lane.b32.xlu1 %v146_v16, 256  ;;  %155 = vbcast.lane.b32.xlu0 %v153_v21, 256 }
  0x38   :  { %99 = vbcast.lane.b32.xlu1 %v97_v19, 256  ;;  %162 = vbcast.lane.b32.xlu0 %v160_v24, 256 }
  0x3c   :  { %106 = vbcast.lane.b32.xlu1 %v104_v22, 256  ;;  %169 = vbcast.lane.b32.xlu0 %v167_v27, 256 }
  0x40   :  { %113 = vbcast.lane.b32.xlu1 %v111_v25, 256  ;;  %176 = vbcast.lane.b32.xlu0 %v174_v29, 256 }
  0x44   :  { %120 = vbcast.lane.b32.xlu1 %v118_v28, 256 }
  0x45   :  { %541 = shalt.err (!%p538_p12)
}
  0x46   :  { %s542_s13 = scalar_lea.hbm %s718_s4, 256 }
  0x47   :  { %p543_p13 = scmp.ne.s32.totalorder %s718_s4, %s542_s13  ;;  %p546_p0 = scmp.lt.u32.totalorder %s542_s13, %s718_s4 }
  0x49   :  { %p548_p1 = pnand %p546_p0, %p543_p13 }
  0x4b   :  { %551 = shalt.err (!%p548_p1)
}
  0x4c   :  { %s584_s18 = smov 128   ;;  %s585_s19 = smov 8   ;;  %v459_v39 = vld [vmem:[#allocation2] sm:$0xff]   ;;  %v494_v43 = vld [vmem:[#allocation2 + $0x28] sm:$0xff]   ;;  %v491_v60 = vld [vmem:[#allocation2 + $0x10] sm:$0xff]   ;;  %vm366_vm7 = vcmask 1041409  }
  0x4d   :  { %448 = dma.vmem_to_hbm [thread:$0]  %s443_s10, 256, %s718_s4, [#allocation7], %s584_s18, %s584_s18, %s585_s19   ;;  %v461_v40 = vunpack.c.h.bf16 %v459_v39  ;;  %v493_v42 = vld [vmem:[#allocation2 + $0x20] sm:$0xff]   ;;  %v490_v44 = vld [vmem:[#allocation2 + $0x8] sm:$0xff]   ;;  %v480_v47 = vunpack.c.l.bf16 %v494_v43  ;;  %v460_v49 = vunpack.c.l.bf16 %v459_v39  ;;  %v481_v58 = vunpack.c.h.bf16 %v494_v43  ;;  %v651_v18 = vld [vmem:[#allocation2 + $0x18] sm:$0xff]  }
  0x4e   :  { %v477_v46 = vunpack.c.h.bf16 %v493_v42  ;;  %v465_v50 = vunpack.c.h.bf16 %v490_v44  ;;  %v476_v51 = vunpack.c.l.bf16 %v493_v42  ;;  %v468_v5 = vunpack.c.l.bf16 %v491_v60  ;;  %v653_v26 = vld [vmem:[#allocation2 + $0x30] sm:$0xff]   ;;  %s586_s4 = smov [#allocation5]  }
  0x4f   :  { %v469_v13 = vunpack.c.h.bf16 %v491_v60  ;;  %v464_v20 = vunpack.c.l.bf16 %v490_v44  ;;  %v472_v29 = vunpack.c.l.bf16 %v651_v18  ;;  %v485_v60 = vunpack.c.h.bf16 %v653_v26  ;;  %s430_s22 = sshll.u32 %s586_s4, 4  ;;  %s431_s22 = int_to_ptr.vmem [resolvable:$true] %s430_s22 }
  0x50   :  { %vm369_vm8 = vcmask 1042434   ;;  %vm372_vm9 = vcmask 1043459   ;;  %vm375_vm10 = vcmask 1044484   ;;  %vm378_vm11 = vcmask 1045509   ;;  %s552_s23 = scalar_lea.vmem %s431_s22, 256  ;;  %p557_p3 = scmp.lt.s32.totalorder %s431_s22, %s431_s22 }
  0x51   :  { %vm381_vm12 = vcmask 1046534   ;;  %vm384_vm13 = vcmask 1047559   ;;  %p553_p2 = scmp.ne.s32.totalorder %s431_s22, %s552_s23  ;;  %p558_p4 = scmp.lt.s32.totalorder %s552_s23, %s552_s23 }
  0x53   :  { %p559_p5 = por %p558_p4, %p557_p3 }
  0x55   :  { %p560_p6 = pnand %p559_p5, %p553_p2 }
  0x8e   :  { %v79_v36 = vpop.permute.xlu1 %78 }
  0x8f   :  { %v179_v45 = vmul.f32 %v461_v40, %v79_v36 }
  0x91   :  { %v200_v52 = vrot.slane %v179_v45, 4 }
  0x92   :  { %v135_v37 = vpop.permute.xlu1 %134 }
  0x93   :  { %v187_v53 = vmul.f32 %v477_v46, %v135_v37  ;;  %v201_v61 = vadd.f32 %v200_v52, %v179_v45 }
  0x95   :  { %v248_v62 = vrot.slane %v187_v53, 4  ;;  %v202_v8 = vrot.slane %v201_v61, 2 }
  0x96   :  { %v142_v38 = vpop.permute.xlu1 %141 }
  0x97   :  { %v188_v54 = vmul.f32 %v480_v47, %v142_v38  ;;  %v249_v9 = vadd.f32 %v248_v62, %v187_v53  ;;  %v203_v21 = vadd.f32 %v202_v8, %v201_v61  ;;  %v484_v38 = vunpack.c.l.bf16 %v653_v26 }
  0x99   :  { %v254_v63 = vrot.slane %v188_v54, 4  ;;  %v250_v22 = vrot.slane %v249_v9, 2  ;;  %v204_v39 = vrot.slane %v203_v21, 1 }
  0x9a   :  { %v72_v41 = vpop.permute.xlu1 %71 }
  0x9b   :  { %v178_v56 = vmul.f32 %v460_v49, %v72_v41  ;;  %v255_v10 = vadd.f32 %v254_v63, %v188_v54  ;;  %v251_v40 = vadd.f32 %v250_v22, %v249_v9  ;;  %v205_v62 = vadd.f32 %v204_v39, %v203_v21 }
  0x9d   :  { %v194_v1 = vrot.slane %v178_v56, 4  ;;  %v256_v23 = vrot.slane %v255_v10, 2  ;;  %v252_v63 = vrot.slane %v251_v40, 1 }
  0x9e   :  { %v93_v48 = vpop.permute.xlu1 %92 }
  0x9f   :  { %v181_v57 = vmul.f32 %v465_v50, %v93_v48  ;;  %v195_v12 = vadd.f32 %v194_v1, %v178_v56  ;;  %v257_v41 = vadd.f32 %v256_v23, %v255_v10  ;;  %v657_v48 = vld [vmem:[#allocation2 + $0x38] sm:$0xff]  }
  0xa0   :  { %v488_v61 = vunpack.c.l.bf16 %v657_v48 }
  0xa1   :  { %v212_v2 = vrot.slane %v181_v57, 4  ;;  %v196_v27 = vrot.slane %v195_v12, 2 }
  0xa2   :  { %v128_v55 = vpop.permute.xlu1 %127 }
  0xa3   :  { %v186_v59 = vmul.f32 %v476_v51, %v128_v55  ;;  %v293_v4 = vpop.xlane.xlu0 %292  ;;  %v213_v14 = vadd.f32 %v212_v2, %v181_v57  ;;  %v197_v44 = vadd.f32 %v196_v27, %v195_v12  ;;  %v473_v57 = vunpack.c.h.bf16 %v651_v18 }
  0xa4   :  { %v297_v7 = vmax.f32 %v293_v4, 1.0  ;;  %v258_v2 = vrot.slane %v257_v41, 1  ;;  %v489_v18 = vunpack.c.h.bf16 %v657_v48 }
  0xa5   :  { %v242_v6 = vrot.slane %v186_v59, 4  ;;  %v214_v30 = vrot.slane %v213_v14, 2 }
  0xa6   :  { %v149_v0 = vpop.permute.xlu1 %148  ;;  %504 = vrcp.f32 %v297_v7 }
  0xa7   :  { %v189_v3 = vmul.f32 %v481_v58, %v149_v0  ;;  %v296_v17 = vpop.xlane.xlu0 %295  ;;  %v243_v19 = vadd.f32 %v242_v6, %v186_v59  ;;  %v215_v49 = vadd.f32 %v214_v30, %v213_v14 }
  0xa8   :  { %v298_v33 = vmax.f32 %v296_v17, 1.0 }
  0xa9   :  { %v260_v15 = vrot.slane %v189_v3, 4  ;;  %v244_v35 = vrot.slane %v243_v19, 2  ;;  %v216_v4 = vrot.slane %v215_v49, 1 }
  0xaa   :  { %v100_v11 = vpop.permute.xlu1 %99  ;;  %506 = vrcp.f32 %v298_v33 }
  0xab   :  { %v182_v16 = vmul.f32 %v468_v5, %v100_v11  ;;  %v261_v31 = vadd.f32 %v260_v15, %v189_v3  ;;  %v86_v34 = vpop.permute.xlu0 %85  ;;  %v245_v54 = vadd.f32 %v244_v35, %v243_v19  ;;  %v198_v3 = vrot.slane %v197_v44, 1 }
  0xac   :  { %v180_v37 = vmul.f32 %v464_v20, %v86_v34  ;;  %v253_v19 = vadd.f32 %v252_v63, %v251_v40  ;;  %v259_v20 = vadd.f32 %v258_v2, %v257_v41  ;;  %v217_v21 = vadd.f32 %v216_v4, %v215_v49 }
  0xad   :  { %v218_v24 = vrot.slane %v182_v16, 4  ;;  %v262_v50 = vrot.slane %v261_v31, 2  ;;  %v246_v7 = vrot.slane %v245_v54, 1  ;;  %v199_v23 = vadd.f32 %v198_v3, %v197_v44 }
  0xae   :  { %v107_v25 = vpop.permute.xlu1 %106  ;;  %v206_v46 = vrot.slane %v180_v37, 4 }
  0xaf   :  { %v183_v28 = vmul.f32 %v469_v13, %v107_v25  ;;  %v219_v32 = vadd.f32 %v218_v24, %v182_v16  ;;  %v156_v52 = vpop.permute.xlu0 %155  ;;  %v263_v5 = vadd.f32 %v262_v50, %v261_v31 }
  0xb0   :  { %v659_v53 = vpop.eup %504  ;;  %v207_v55 = vadd.f32 %v206_v46, %v180_v37  ;;  %v190_v10 = vmul.f32 %v484_v38, %v156_v52 }
  0xb1   :  { %v224_v36 = vrot.slane %v183_v28, 4  ;;  %v220_v42 = vrot.slane %v219_v32, 2  ;;  %v303_v0 = vrot.slane %v659_v53, 1  ;;  %v306_v11 = vrot.slane %v659_v53, 4 }
  0xb2   :  { %v114_v43 = vpop.permute.xlu1 %113  ;;  %v208_v1 = vrot.slane %v207_v55, 2  ;;  %v305_v14 = vrot.slane %v659_v53, 3  ;;  %v264_v22 = vrot.slane %v263_v5, 1  ;;  %v304_v24 = vrot.slane %v659_v53, 2 }
  0xb3   :  { %v225_v45 = vadd.f32 %v224_v36, %v183_v28  ;;  %v184_v47 = vmul.f32 %v472_v29, %v114_v43  ;;  %v221_v51 = vadd.f32 %v220_v42, %v219_v32  ;;  %v163_v6 = vpop.permute.xlu0 %162  ;;  %v334_v16 = vmul.f32 %v303_v0, %v205_v62 }
  0xb4   :  { %v209_v8 = vadd.f32 %v208_v1, %v207_v55  ;;  %v266_v26 = vrot.slane %v190_v10, 4  ;;  %v669_v28 = vpop.eup %506  ;;  %v247_v29 = vadd.f32 %v246_v7, %v245_v54  ;;  %v336_v32 = vmul.f32 %v305_v14, %v217_v21 }
  0xb5   :  { %v230_v56 = vrot.slane %v184_v47, 4  ;;  %v222_v58 = vrot.slane %v221_v51, 1  ;;  %v226_v59 = vrot.slane %v225_v45, 2  ;;  %v365_v35 = vrot.slane %v334_v16, 7 }
  0xb6   :  { %v210_v15 = vrot.slane %v209_v8, 1  ;;  %v121_v33 = vpop.permute.xlu1 %120  ;;  %v267_v37 = vadd.f32 %v266_v26, %v190_v10  ;;  %v265_v38 = vadd.f32 %v264_v22, %v263_v5  ;;  %v307_v39 = vrot.slane %v659_v53, 5 }
  0xb7   :  { %v231_v9 = vadd.f32 %v230_v56, %v184_v47  ;;  %v223_v12 = vadd.f32 %v222_v58, %v221_v51  ;;  %v227_v13 = vadd.f32 %v226_v59, %v225_v45  ;;  %v170_v27 = vpop.permute.xlu0 %169  ;;  %v333_v40 = vmul.f32 %v659_v53, %v199_v23 }
  0xb8   :  { %v211_v25 = vadd.f32 %v210_v15, %v209_v8  ;;  %v308_v41 = vrot.slane %v659_v53, 6  ;;  %v310_v43 = vrot.slane %v669_v28, 1  ;;  %v268_v44 = vrot.slane %v267_v37, 2 }
  0xb9   :  { %v232_v17 = vrot.slane %v231_v9, 2  ;;  %v337_v30 = vmul.f32 %v306_v11, %v223_v12  ;;  %v228_v31 = vrot.slane %v227_v13, 1  ;;  %v185_v45 = vmul.f32 %v473_v57, %v121_v33 }
  0xba   :  { %v335_v34 = vmul.f32 %v304_v24, %v211_v25  ;;  %v371_v47 = vrot.slane %v336_v32, 5  ;;  %v311_v49 = vrot.slane %v669_v28, 2  ;;  %v191_v50 = vmul.f32 %v485_v60, %v163_v6 }
  0xbb   :  { %v233_v36 = vadd.f32 %v232_v17, %v231_v9  ;;  %v229_v46 = vadd.f32 %v228_v31, %v227_v13  ;;  %v374_v51 = vrot.slane %v337_v30, 4  ;;  %v367_v52 = vsel %vm366_vm7, %v365_v35, %v333_v40  ;;  %v177_v56 = vpop.permute.xlu0 %176 }
  0xbc   :  { %v368_v42 = vrot.slane %v335_v34, 6  ;;  %v269_v55 = vadd.f32 %v268_v44, %v267_v37  ;;  %v312_v58 = vrot.slane %v669_v28, 3  ;;  %v313_v59 = vrot.slane %v669_v28, 4 }
  0xbd   :  { %v234_v54 = vrot.slane %v233_v36, 1  ;;  %v236_v62 = vrot.slane %v185_v45, 4  ;;  %v272_v63 = vrot.slane %v191_v50, 4  ;;  %v342_v1 = vmul.f32 %v310_v43, %v253_v19 }
  0xbe   :  { %v370_v57 = vsel %vm369_vm8, %v368_v42, %v367_v52  ;;  %v270_v0 = vrot.slane %v269_v55, 1  ;;  %v192_v60 = vmul.f32 %v488_v61, %v170_v27  ;;  %v338_v2 = vmul.f32 %v307_v39, %v229_v46 }
  0xbf   :  { %v237_v3 = vadd.f32 %v236_v62, %v185_v45  ;;  %v273_v4 = vadd.f32 %v272_v63, %v191_v50  ;;  %v193_v5 = vmul.f32 %v489_v18, %v177_v56  ;;  %v235_v6 = vadd.f32 %v234_v54, %v233_v36 }
  0xc0   :  { %v341_v7 = vmul.f32 %v669_v28, %v247_v29  ;;  %v343_v8 = vmul.f32 %v311_v49, %v259_v20  ;;  %v278_v9 = vrot.slane %v192_v60, 4  ;;  %v373_v10 = vsel %vm372_vm9, %v371_v47, %v370_v57 }
  0xc1   :  { %v238_v11 = vrot.slane %v237_v3, 2  ;;  %v274_v12 = vrot.slane %v273_v4, 2  ;;  %v284_v13 = vrot.slane %v193_v5, 4  ;;  %v271_v14 = vadd.f32 %v270_v0, %v269_v55 }
  0xc2   :  { %v344_v15 = vmul.f32 %v312_v58, %v265_v38  ;;  %v386_v16 = vrot.slane %v342_v1, 7  ;;  %v279_v48 = vadd.f32 %v278_v9, %v192_v60  ;;  %v377_v61 = vrot.slane %v338_v2, 3 }
  0xc3   :  { %v239_v17 = vadd.f32 %v238_v11, %v237_v3  ;;  %v275_v19 = vadd.f32 %v274_v12, %v273_v4  ;;  %v285_v21 = vadd.f32 %v284_v13, %v193_v5  ;;  %v339_v18 = vmul.f32 %v308_v41, %v235_v6 }
  0xc4   :  { %v388_v22 = vrot.slane %v343_v8, 6  ;;  %v280_v23 = vrot.slane %v279_v48, 2  ;;  %v376_v24 = vsel %vm375_vm10, %v374_v51, %v373_v10  ;;  %v309_v20 = vrot.slane %v659_v53, 7 }
  0xc5   :  { %v240_v25 = vrot.slane %v239_v17, 1  ;;  %v276_v26 = vrot.slane %v275_v19, 1  ;;  %v286_v27 = vrot.slane %v285_v21, 2  ;;  %v345_v29 = vmul.f32 %v313_v59, %v271_v14 }
  0xc6   :  { %v387_v30 = vsel %vm366_vm7, %v386_v16, %v341_v7  ;;  %v314_v31 = vrot.slane %v669_v28, 5  ;;  %v281_v32 = vadd.f32 %v280_v23, %v279_v48  ;;  %v379_v36 = vsel %vm378_vm11, %v377_v61, %v376_v24 }
  0xc7   :  { %v241_v33 = vadd.f32 %v240_v25, %v239_v17  ;;  %v277_v34 = vadd.f32 %v276_v26, %v275_v19  ;;  %v287_v35 = vadd.f32 %v286_v27, %v285_v21  ;;  %v380_v37 = vrot.slane %v339_v18, 2 }
  0xc8   :  { %v390_v38 = vrot.slane %v344_v15, 5  ;;  %v282_v39 = vrot.slane %v281_v32, 1  ;;  %v315_v41 = vrot.slane %v669_v28, 6  ;;  %v389_v43 = vsel %vm369_vm8, %v388_v22, %v387_v30 }
  0xc9   :  { %v340_v40 = vmul.f32 %v309_v20, %v241_v33  ;;  %v346_v53 = vmul.f32 %v314_v31, %v277_v34  ;;  %v288_v42 = vrot.slane %v287_v35, 1  ;;  %v392_v44 = vrot.slane %v345_v29, 4 }
  0xca   :  { %v283_v45 = vadd.f32 %v282_v39, %v281_v32  ;;  %v382_v46 = vsel %vm381_vm12, %v380_v37, %v379_v36  ;;  %v316_v50 = vrot.slane %v669_v28, 7  ;;  %v391_v54 = vsel %vm372_vm9, %v390_v38, %v389_v43 }
  0xcb   :  { %v383_v47 = vrot.slane %v340_v40, 1  ;;  %v394_v49 = vrot.slane %v346_v53, 3  ;;  %v289_v51 = vadd.f32 %v288_v42, %v287_v35  ;;  %v393_v58 = vsel %vm375_vm10, %v392_v44, %v391_v54 }
  0xcc   :  { %v347_v52 = vmul.f32 %v315_v41, %v283_v45 }
  0xcd   :  { %v348_v55 = vmul.f32 %v316_v50, %v289_v51  ;;  %v385_v56 = vsel %vm384_vm13, %v383_v47, %v382_v46  ;;  %v395_v62 = vsel %vm378_vm11, %v394_v49, %v393_v58 }
  0xce   :  { %v396_v59 = vrot.slane %v347_v52, 2  ;;  %402 = vst [vmem:[#allocation5] sm:$0xff] %v385_v56 }
  0xcf   :  { %v398_v63 = vrot.slane %v348_v55, 1 }
  0xd0   :  { %v397_v57 = vsel %vm381_vm12, %v396_v59, %v395_v62 }
  0xd1   :  { %v399_v28 = vsel %vm384_vm13, %v398_v63, %v397_v57 }
  0xd2   :  { %403 = vst [vmem:[#allocation5 + $0x8] sm:$0xff] %v399_v28 }
  0xd3   :  { %563 = shalt.err (!%p560_p6)
}
  0xd4   :  { %s564_s26 = scalar_lea.hbm %s717_s3, 256 }
  0xd5   :  { %p565_p7 = scmp.ne.s32.totalorder %s717_s3, %s564_s26  ;;  %p568_p8 = scmp.lt.u32.totalorder %s564_s26, %s717_s3 }
  0xd7   :  { %p570_p9 = pnand %p568_p8, %p565_p7 }
  0xd9   :  { %573 = shalt.err (!%p570_p9)
}
  0xda   :  { %436 = dma.vmem_to_hbm [thread:$0]  %s431_s22, 256, %s717_s3, [#allocation4], %s584_s18, %s584_s18, %s585_s19  }
  0xdb   :  { %576 = dma.done.wait [#allocation4], 256  }
  0xdc   :  { %577 = vsyncadd [#allocation4], 4294967040 }
  0xdd   :  { %578 = dma.done.wait [#allocation7], 256  }
  0xde   :  { %579 = vsyncadd [#allocation7], 4294967040 }
  0xdf   :  { %455 = vsyncpa [#allocation3], 1 }
  0xe0   :  { %456 = vsyncpa [#allocation4], 1 }
  0xe1   :  { %457 = vsyncpa [#allocation7], 1 }

</bundles_post_ra>
